<compile_context>
chip_gen: v7x
topology: tpu7x:2x2x1
jax: 0.10.0
libtpu: 0.0.40
codegen_flags: <defaults>
</compile_context>

<pallas_src>
import math
import functools

import jax
import jax.numpy as jnp
from jax.experimental import pallas as pl
from jax.experimental.pallas import tpu as pltpu


def _round_up(x, m):
    return (x + m - 1) // m * m


def _pad_to(a, rows, cols, dtype):
    out = jnp.zeros((rows, cols), dtype)
    return out.at[:a.shape[0], :a.shape[1]].set(a.astype(dtype))


def _vmem_capacity_bytes():
    try:
        return int(pltpu.get_tpu_info().vmem_capacity_bytes)
    except Exception:
        return 64 * 1024 * 1024  # conservative fallback (v7x-sized)


# -------------- fused linear (x & x') forward + DeYO statistics kernel --------------

def deyo_fused_kernel(x_ref, xp_ref, w_ref, b_ref,
                      out_ref, stats_ref,
                      accp_ref,
                      *, num_classes, batch, tm, num_k,
                      deyo_margin, margin_e0, plpd_threshold):
    # All pl.program_id calls are hoisted to the top level of the kernel body
    # (never bound inside a pl.when / lax.cond branch).
    m = pl.program_id(0)
    k = pl.program_id(1)
    row_start = m * tm

    @pl.when(k == 0)
    def _():
        out_ref[...] = jnp.zeros_like(out_ref)
        accp_ref[...] = jnp.zeros_like(accp_ref)

    # One W tile load, two MXU pushes (x and x'): W is read from HBM only once
    # per (M, K) step instead of twice.
    # TODO(synk): on v6e/v7x (256-wide MXU) the x/x' tiles could be stacked
    # along M into one (2*tm, tk) push when tm < 256.
    w_blk = w_ref[...]
    out_ref[...] += jnp.dot(x_ref[...], w_blk, preferred_element_type=jnp.float32)
    accp_ref[...] += jnp.dot(xp_ref[...], w_blk, preferred_element_type=jnp.float32)

    @pl.when(k == num_k - 1)
    def _():
        bias = b_ref[...]                                   # (1, Cpad) f32
        logits = out_ref[...] + bias                        # (tm, Cpad) f32
        logits_p = accp_ref[...] + bias                     # x'-logits stay in VMEM
        out_ref[...] = logits

        # TODO(synk): for tm*c_pad tiles that exceed the vreg file, process this
        # epilogue in sublane chunks (lax.fori_loop unroll=True) to avoid spills.
        col = jax.lax.broadcasted_iota(jnp.int32, logits.shape, 1)
        col_valid = col < num_classes
        neg_big = jnp.float32(-1e30)
        z = jnp.where(col_valid, logits, neg_big)
        zp = jnp.where(col_valid, logits_p, neg_big)

        def log_softmax(v):
            vm = jnp.max(v, axis=-1, keepdims=True)
            s = v - vm
            return s - jnp.log(jnp.sum(jnp.exp(s), axis=-1, keepdims=True))

        # softmax_entropy(outputs)
        logp = log_softmax(z)
        p = jnp.exp(logp)
        ent = -jnp.sum(jnp.where(col_valid, p * logp, 0.0),
                       axis=-1, keepdims=True)               # (tm, 1)

        pp = jnp.exp(log_softmax(zp))

        # valid (non-padded) rows of this M tile: (tm,1) iota compare, no lane reduce
        row = jax.lax.broadcasted_iota(jnp.int32, (tm, 1), 0)
        row_valid = (row + row_start) < batch                # (tm, 1)

        # filter_ids_1 : entropy < deyo_margin
        mask1 = jnp.logical_and(ent < deyo_margin, row_valid)

        # cls1 = argmax(softmax(outputs)) (first max index). p[cls1] == pmax by
        # construction, so only pp needs the one-hot gather.
        pmax = jnp.max(p, axis=-1, keepdims=True)
        cand = jnp.where(jnp.logical_and(p == pmax, col_valid), col, num_classes)
        cls1 = jnp.min(cand, axis=-1, keepdims=True)
        pp_sel = jnp.sum(jnp.where(col == cls1, pp, 0.0), axis=-1, keepdims=True)
        plpd = pmax - pp_sel                                  # (tm, 1)

        # filter_ids_2 : plpd > 0.2 (within filter_ids_1)
        mask2 = jnp.logical_and(mask1, plpd > plpd_threshold)

        # coeff = 1/exp(ent - margin) + 1/exp(-plpd) = exp(margin - ent) + exp(plpd)
        coeff = jnp.exp(margin_e0 - ent) + jnp.exp(plpd)
        weighted = ent * coeff

        backward = jnp.sum(jnp.where(mask1, 1.0, 0.0), keepdims=True)        # (1,1)
        final_backward = jnp.sum(jnp.where(mask2, 1.0, 0.0), keepdims=True)  # (1,1)
        loss_sum = jnp.sum(jnp.where(mask2, weighted, 0.0), keepdims=True)   # (1,1)

        # single lane-dense stats slab: lane0=backward, lane1=final_backward, lane2=loss_sum
        lane = jax.lax.broadcasted_iota(jnp.int32, (8, 128), 1)
        stats_ref[...] = (jnp.where(lane == 0, backward, 0.0)
                          + jnp.where(lane == 1, final_backward, 0.0)
                          + jnp.where(lane == 2, loss_sum, 0.0))


# ------------------------------ wrapper-side helpers --------------------------------

def patch_shuffle(x, key, ps=4):
    """rearrange 'b c (ps1 h) (ps2 w) -> b (ps1 ps2) c h w', permute patches per
    sample, rearrange back. H, W are multiples of ps so the torchvision resizes
    of the reference are identities."""
    B, C, H, W = x.shape
    hp, wp = H // ps, W // ps
    xp = x.reshape(B, C, ps, hp, ps, wp).transpose(0, 2, 4, 1, 3, 5)
    xp = xp.reshape(B, ps * ps, C, hp, wp)
    perm = jnp.argsort(jax.random.uniform(key, (B, ps * ps)), axis=-1)
    xp = xp[jnp.arange(B)[:, None], perm]
    xp = xp.reshape(B, ps, ps, C, hp, wp).transpose(0, 3, 1, 4, 2, 5)
    return xp.reshape(B, C, H, W)


def deyo_pack_params(w, b):
    """One-time packing of the classifier weights. Hoisted out of the
    per-adaptation-step path: re-padding / re-casting W every call writes and
    re-reads the dominant HBM stream (~2x traffic on a memory-bound kernel)."""
    F, num_classes = w.shape
    c_pad = _round_up(num_classes, 128)          # lane-dense logits output
    vmem_cap = _vmem_capacity_bytes()
    tk_cap = 4096 if vmem_cap > (64 << 20) else 2048   # bigger K tiles on 128-MiB parts
    tk = min(_round_up(F, 128), tk_cap)
    f_pad = _round_up(F, tk)
    # leave headroom: ~75% of physical VMEM, capped at 100 MiB
    vmem_limit = min(vmem_cap * 3 // 4, 100 * 1024 * 1024)
    return dict(
        w=_pad_to(w, f_pad, c_pad, jnp.bfloat16),
        bias=_pad_to(b.reshape(1, -1), 1, c_pad, jnp.float32),
        F=F, num_classes=num_classes, c_pad=c_pad, tk=tk, f_pad=f_pad,
        vmem_limit=int(vmem_limit))


# ------------------------------ DeYO forward (wrapper) ------------------------------

def deyo_forward(x, params, key, deyo_margin, margin_e0, plpd_threshold=0.2):
    """Forward-and-adapt semantics of DeYO (targets=None, flag=True, steps=1).
    Returns (outputs, backward, final_backward, loss)."""
    B, C_in, H, W_sp = x.shape
    F = C_in * H * W_sp
    assert F == params["F"]
    num_classes = params["num_classes"]
    c_pad, tk, f_pad = params["c_pad"], params["tk"], params["f_pad"]

    x_flat = x.reshape(B, F)
    # TODO(synk): fold the patch shuffle into the x'-matmul via scalar-prefetch
    # index gathers (per-sample permutation table in SMEM) so x_prime never
    # materializes in HBM; kept as plain-JAX glue here.
    xp_flat = patch_shuffle(x, key, ps=4).reshape(B, F)

    # Minimize the number of M tiles: W is re-streamed from HBM once per M tile,
    # which dominates bytes for realistic DeYO sizes.
    # TODO(synk): on dual-TensorCore parts (v7x) use tm = round_up(B/2, 8) when
    # B <= 256 so the "parallel" M axis feeds both cores.
    tm = min(_round_up(B, 8), 256)
    b_pad = _round_up(B, tm)
    num_m = b_pad // tm
    num_k = f_pad // tk

    x_b = _pad_to(x_flat, b_pad, f_pad, jnp.bfloat16)
    xp_b = _pad_to(xp_flat, b_pad, f_pad, jnp.bfloat16)

    kernel = functools.partial(
        deyo_fused_kernel,
        num_classes=num_classes, batch=B, tm=tm, num_k=num_k,
        deyo_margin=float(deyo_margin), margin_e0=float(margin_e0),
        plpd_threshold=float(plpd_threshold))

    logits_pad, stats = pl.pallas_call(
        kernel,
        out_shape=(jax.ShapeDtypeStruct((b_pad, c_pad), jnp.float32),
                   jax.ShapeDtypeStruct((num_m * 8, 128), jnp.float32)),
        grid=(num_m, num_k),
        in_specs=[
            pl.BlockSpec((tm, tk), lambda m, k: (m, k)),        # x
            pl.BlockSpec((tm, tk), lambda m, k: (m, k)),        # x'
            pl.BlockSpec((tk, c_pad), lambda m, k: (k, 0)),     # W (shared x / x')
            pl.BlockSpec((1, c_pad), lambda m, k: (0, 0)),      # bias
        ],
        out_specs=(
            pl.BlockSpec((tm, c_pad), lambda m, k: (m, 0)),     # logits = x accumulator
            pl.BlockSpec((8, 128), lambda m, k: (m, 0)),        # per-tile stats slab
        ),
        scratch_shapes=[pltpu.VMEM((tm, c_pad), jnp.float32)],  # acc (x') only
        compiler_params=pltpu.CompilerParams(
            dimension_semantics=("parallel", "arbitrary"),
            vmem_limit_bytes=params["vmem_limit"]),
    )(x_b, xp_b, params["w"], params["bias"])

    outputs = logits_pad[:B, :num_classes]
    per_tile = stats[0::8, :]                        # (num_m, 128)
    backward = jnp.sum(per_tile[:, 0])
    final_backward = jnp.sum(per_tile[:, 1])
    loss_sum = jnp.sum(per_tile[:, 2])
    loss = jnp.where(final_backward > 0,
                     loss_sum / jnp.maximum(final_backward, 1.0), 0.0)
    # TODO(synk): loss.backward(); optimizer.step() omitted (no Pallas equivalent).
    return outputs, backward, final_backward, loss


# ------------------------------------- main ---------------------------------------

if __name__ == "__main__":
    B, C, H, W = 2, 4, 16, 16
    NUM_CLASSES = 16
    F = C * H * W

    deyo_margin = 0.5 * math.log(1000)
    margin_e0 = 0.4 * math.log(1000)

    key = jax.random.PRNGKey(0)
    kx, kw, kb, kperm = jax.random.split(key, 4)

    x = jax.random.normal(kx, (B, C, H, W), dtype=jnp.float32)
    w = jax.random.normal(kw, (F, NUM_CLASSES), dtype=jnp.float32) * 0.02
    bvec = jax.random.normal(kb, (NUM_CLASSES,), dtype=jnp.float32) * 0.01

    # Pack the classifier weights ONCE (reused across adaptation steps/calls).
    params = deyo_pack_params(w, bvec)

    outputs, backward, final_backward, loss = deyo_forward(
        x, params, kperm, deyo_margin, margin_e0)
    jax.block_until_ready((outputs, backward, final_backward, loss))

    # light sanity check of the fused matmul (same bf16-cast operands, f32 ref)
    x_ref = x.reshape(B, -1).astype(jnp.bfloat16).astype(jnp.float32)
    w_ref = w.astype(jnp.bfloat16).astype(jnp.float32)
    ref_logits = jnp.dot(x_ref, w_ref, precision=jax.lax.Precision.HIGHEST) + bvec
    assert jnp.allclose(outputs, ref_logits, rtol=2e-2, atol=2e-2), "logit mismatch"

    print("KERNEL_OK")
</pallas_src>

<mosaic_0001>
module attributes {stable_mosaic.version = 11 : i64} {
  func.func @deyo_fused_kernel(%arg0: i32, %arg1: i32, %arg2: memref<8x1024xbf16, #tpu.memory_space<vmem>>, %arg3: memref<8x1024xbf16, #tpu.memory_space<vmem>>, %arg4: memref<1024x128xbf16, #tpu.memory_space<vmem>>, %arg5: memref<1x128xf32, #tpu.memory_space<vmem>>, %arg6: memref<8x128xf32, #tpu.memory_space<vmem>>, %arg7: memref<8x128xf32, #tpu.memory_space<vmem>>, %arg8: memref<8x128xf32, #tpu.memory_space<vmem>>) attributes {dimension_semantics = [#tpu.dimension_semantics<parallel>, #tpu.dimension_semantics<arbitrary>], iteration_bounds = array<i64: 1, 1>, scalar_prefetch = 0 : i64, scratch_operands = 1 : i64, tpu.core_type = #tpu.core_type<tc>, window_params = [{transform_indices = @transform_0, window_bounds = array<i64: 8, 1024>}, {transform_indices = @transform_1, window_bounds = array<i64: 8, 1024>}, {transform_indices = @transform_2, window_bounds = array<i64: 1024, 128>}, {pipeline_mode = #tpu.pipeline_mode<synchronous>, transform_indices = @transform_3, window_bounds = array<i64: 1, 128>}, {transform_indices = @transform_4, window_bounds = array<i64: 8, 128>}, {transform_indices = @transform_5, window_bounds = array<i64: 8, 128>}]} {
    %c8_i32 = arith.constant 8 : i32
    %0 = arith.muli %arg0, %c8_i32 : i32
    %c0_i32 = arith.constant 0 : i32
    %1 = arith.cmpi eq, %arg1, %c0_i32 : i32
    %2 = arith.extui %1 : i1 to i32
    %c0_i32_0 = arith.constant 0 : i32
    %3 = arith.cmpi ne, %2, %c0_i32_0 : i32
    scf.if %3 {
      %cst_17 = arith.constant 0.000000e+00 : f32
      %18 = vector.broadcast %cst_17 : f32 to vector<8x128xf32>
      %c0_18 = arith.constant 0 : index
      %c0_19 = arith.constant 0 : index
      %19 = vector.load %arg6[%c0_18, %c0_19] : memref<8x128xf32, #tpu.memory_space<vmem>>, vector<8x128xf32>
      tpu.vector_store %arg6[%c0_18, %c0_19], %18 {strides = array<i32>} : memref<8x128xf32, #tpu.memory_space<vmem>>, vector<8x128xf32>,
      %cst_20 = arith.constant 0.000000e+00 : f32
      %20 = vector.broadcast %cst_20 : f32 to vector<8x128xf32>
      %c0_21 = arith.constant 0 : index
      %c0_22 = arith.constant 0 : index
      %21 = vector.load %arg8[%c0_21, %c0_22] : memref<8x128xf32, #tpu.memory_space<vmem>>, vector<8x128xf32>
      tpu.vector_store %arg8[%c0_21, %c0_22], %20 {strides = array<i32>} : memref<8x128xf32, #tpu.memory_space<vmem>>, vector<8x128xf32>,
    } else {
    }
    %c0 = arith.constant 0 : index
    %c0_1 = arith.constant 0 : index
    %4 = vector.load %arg4[%c0, %c0_1] : memref<1024x128xbf16, #tpu.memory_space<vmem>>, vector<1024x128xbf16>
    %c0_2 = arith.constant 0 : index
    %c0_3 = arith.constant 0 : index
    %5 = vector.load %arg6[%c0_2, %c0_3] : memref<8x128xf32, #tpu.memory_space<vmem>>, vector<8x128xf32>
    %c0_4 = arith.constant 0 : index
    %c0_5 = arith.constant 0 : index
    %6 = vector.load %arg2[%c0_4, %c0_5] : memref<8x1024xbf16, #tpu.memory_space<vmem>>, vector<8x1024xbf16>
    %cst = arith.constant dense<0.000000e+00> : vector<8x128xf32>
    %7 = tpu.matmul %6, %4, %cst {dimension_numbers = #tpu.dot_dimension_numbers<[1], [0], [0], [1], [0, 0, 1, 1], [], []>} : vector<8x1024xbf16>, vector<1024x128xbf16>, vector<8x128xf32> -> vector<8x128xf32>
    %8 = arith.addf %5, %7 : vector<8x128xf32>
    %c0_6 = arith.constant 0 : index
    %c0_7 = arith.constant 0 : index
    %9 = vector.load %arg6[%c0_6, %c0_7] : memref<8x128xf32, #tpu.memory_space<vmem>>, vector<8x128xf32>
    tpu.vector_store %arg6[%c0_6, %c0_7], %8 {strides = array<i32>} : memref<8x128xf32, #tpu.memory_space<vmem>>, vector<8x128xf32>,
    %c0_8 = arith.constant 0 : index
    %c0_9 = arith.constant 0 : index
    %10 = vector.load %arg8[%c0_8, %c0_9] : memref<8x128xf32, #tpu.memory_space<vmem>>, vector<8x128xf32>
    %c0_10 = arith.constant 0 : index
    %c0_11 = arith.constant 0 : index
    %11 = vector.load %arg3[%c0_10, %c0_11] : memref<8x1024xbf16, #tpu.memory_space<vmem>>, vector<8x1024xbf16>
    %cst_12 = arith.constant dense<0.000000e+00> : vector<8x128xf32>
    %12 = tpu.matmul %11, %4, %cst_12 {dimension_numbers = #tpu.dot_dimension_numbers<[1], [0], [0], [1], [0, 0, 1, 1], [], []>} : vector<8x1024xbf16>, vector<1024x128xbf16>, vector<8x128xf32> -> vector<8x128xf32>
    %13 = arith.addf %10, %12 : vector<8x128xf32>
    %c0_13 = arith.constant 0 : index
    %c0_14 = arith.constant 0 : index
    %14 = vector.load %arg8[%c0_13, %c0_14] : memref<8x128xf32, #tpu.memory_space<vmem>>, vector<8x128xf32>
    tpu.vector_store %arg8[%c0_13, %c0_14], %13 {strides = array<i32>} : memref<8x128xf32, #tpu.memory_space<vmem>>, vector<8x128xf32>,
    %c0_i32_15 = arith.constant 0 : i32
    %15 = arith.cmpi eq, %arg1, %c0_i32_15 : i32
    %16 = arith.extui %15 : i1 to i32
    %c0_i32_16 = arith.constant 0 : i32
    %17 = arith.cmpi ne, %16, %c0_i32_16 : i32
    scf.if %17 {
      %c0_17 = arith.constant 0 : index
      %c0_18 = arith.constant 0 : index
      %18 = vector.load %arg5[%c0_17, %c0_18] : memref<1x128xf32, #tpu.memory_space<vmem>>, vector<1x128xf32>
      %c0_19 = arith.constant 0 : index
      %c0_20 = arith.constant 0 : index
      %19 = vector.load %arg6[%c0_19, %c0_20] : memref<8x128xf32, #tpu.memory_space<vmem>>, vector<8x128xf32>
      %20 = vector.broadcast %18 : vector<1x128xf32> to vector<8x128xf32>
      %21 = arith.addf %19, %20 : vector<8x128xf32>
      %c0_21 = arith.constant 0 : index
      %c0_22 = arith.constant 0 : index
      %22 = vector.load %arg8[%c0_21, %c0_22] : memref<8x128xf32, #tpu.memory_space<vmem>>, vector<8x128xf32>
      %23 = vector.broadcast %18 : vector<1x128xf32> to vector<8x128xf32>
      %24 = arith.addf %22, %23 : vector<8x128xf32>
      %c0_23 = arith.constant 0 : index
      %c0_24 = arith.constant 0 : index
      %25 = vector.load %arg6[%c0_23, %c0_24] : memref<8x128xf32, #tpu.memory_space<vmem>>, vector<8x128xf32>
      tpu.vector_store %arg6[%c0_23, %c0_24], %21 {strides = array<i32>} : memref<8x128xf32, #tpu.memory_space<vmem>>, vector<8x128xf32>,
      %26 = tpu.iota {dimensions = array<i32: 1>} : vector<8x128xi32>
      %c16_i32 = arith.constant 16 : i32
      %27 = vector.broadcast %c16_i32 : i32 to vector<8x128xi32>
      %28 = arith.cmpi slt, %26, %27 : vector<8x128xi32>
      %cst_25 = arith.constant -1.000000e+30 : f32
      %29 = vector.broadcast %cst_25 : f32 to vector<8x128xf32>
      %30 = arith.select %28, %21, %29 : vector<8x128xi1>, vector<8x128xf32>
      %cst_26 = arith.constant -1.000000e+30 : f32
      %31 = vector.broadcast %cst_26 : f32 to vector<8x128xf32>
      %32 = arith.select %28, %24, %31 : vector<8x128xi1>, vector<8x128xf32>
      %cst_27 = arith.constant dense<0xFF800000> : vector<8xf32>
      %33 = vector.multi_reduction <maximumf>, %30, %cst_27 [1] : vector<8x128xf32> to vector<8xf32>
      %34 = vector.shape_cast %33 : vector<8xf32> to vector<8x1xf32>
      %35 = vector.broadcast %34 : vector<8x1xf32> to vector<8x128xf32>
      %36 = arith.subf %30, %35 : vector<8x128xf32>
      %37 = math.exp %36 : vector<8x128xf32>
      %cst_28 = arith.constant dense<0.000000e+00> : vector<8xf32>
      %38 = vector.multi_reduction <add>, %37, %cst_28 [1] : vector<8x128xf32> to vector<8xf32>
      %39 = vector.shape_cast %38 : vector<8xf32> to vector<8x1xf32>
      %40 = math.log %39 : vector<8x1xf32>
      %41 = vector.broadcast %40 : vector<8x1xf32> to vector<8x128xf32>
      %42 = arith.subf %36, %41 : vector<8x128xf32>
      %43 = math.exp %42 : vector<8x128xf32>
      %44 = arith.mulf %43, %42 : vector<8x128xf32>
      %cst_29 = arith.constant 0.000000e+00 : f32
      %45 = vector.broadcast %cst_29 : f32 to vector<8x128xf32>
      %46 = arith.select %28, %44, %45 : vector<8x128xi1>, vector<8x128xf32>
      %cst_30 = arith.constant dense<0.000000e+00> : vector<8xf32>
      %47 = vector.multi_reduction <add>, %46, %cst_30 [1] : vector<8x128xf32> to vector<8xf32>
      %48 = vector.shape_cast %47 : vector<8xf32> to vector<8x1xf32>
      %cst_31 = arith.constant 0.000000e+00 : f32
      %49 = vector.broadcast %cst_31 : f32 to vector<8x1xf32>
      %50 = arith.subf %49, %48 : vector<8x1xf32>
      %cst_32 = arith.constant dense<0xFF800000> : vector<8xf32>
      %51 = vector.multi_reduction <maximumf>, %32, %cst_32 [1] : vector<8x128xf32> to vector<8xf32>
      %52 = vector.shape_cast %51 : vector<8xf32> to vector<8x1xf32>
      %53 = vector.broadcast %52 : vector<8x1xf32> to vector<8x128xf32>
      %54 = arith.subf %32, %53 : vector<8x128xf32>
      %55 = math.exp %54 : vector<8x128xf32>
      %cst_33 = arith.constant dense<0.000000e+00> : vector<8xf32>
      %56 = vector.multi_reduction <add>, %55, %cst_33 [1] : vector<8x128xf32> to vector<8xf32>
      %57 = vector.shape_cast %56 : vector<8xf32> to vector<8x1xf32>
      %58 = math.log %57 : vector<8x1xf32>
      %59 = vector.broadcast %58 : vector<8x1xf32> to vector<8x128xf32>
      %60 = arith.subf %54, %59 : vector<8x128xf32>
      %61 = math.exp %60 : vector<8x128xf32>
      %62 = tpu.iota {dimensions = array<i32: 0>} : vector<8x1xi32>
      %63 = vector.broadcast %0 : i32 to vector<8x1xi32>
      %64 = arith.addi %62, %63 : vector<8x1xi32>
      %c2_i32 = arith.constant 2 : i32
      %65 = vector.broadcast %c2_i32 : i32 to vector<8x1xi32>
      %66 = arith.cmpi slt, %64, %65 : vector<8x1xi32>
      %cst_34 = arith.constant 3.45387769 : f32
      %67 = vector.broadcast %cst_34 : f32 to vector<8x1xf32>
      %68 = arith.cmpf olt, %50, %67 : vector<8x1xf32>
      %69 = arith.andi %68, %66 : vector<8x1xi1>
      %cst_35 = arith.constant dense<0xFF800000> : vector<8xf32>
      %70 = vector.multi_reduction <maximumf>, %43, %cst_35 [1] : vector<8x128xf32> to vector<8xf32>
      %71 = vector.shape_cast %70 : vector<8xf32> to vector<8x1xf32>
      %72 = vector.broadcast %71 : vector<8x1xf32> to vector<8x128xf32>
      %73 = arith.cmpf oeq, %43, %72 : vector<8x128xf32>
      %74 = arith.andi %73, %28 : vector<8x128xi1>
      %c16_i32_36 = arith.constant 16 : i32
      %75 = vector.broadcast %c16_i32_36 : i32 to vector<8x128xi32>
      %76 = arith.select %74, %26, %75 : vector<8x128xi1>, vector<8x128xi32>
      %cst_37 = arith.constant dense<2147483647> : vector<8xi32>
      %77 = vector.multi_reduction <minsi>, %76, %cst_37 [1] : vector<8x128xi32> to vector<8xi32>
      %78 = vector.shape_cast %77 : vector<8xi32> to vector<8x1xi32>
      %79 = vector.broadcast %78 : vector<8x1xi32> to vector<8x128xi32>
      %80 = arith.cmpi eq, %26, %79 : vector<8x128xi32>
      %cst_38 = arith.constant 0.000000e+00 : f32
      %81 = vector.broadcast %cst_38 : f32 to vector<8x128xf32>
      %82 = arith.select %80, %61, %81 : vector<8x128xi1>, vector<8x128xf32>
      %cst_39 = arith.constant dense<0.000000e+00> : vector<8xf32>
      %83 = vector.multi_reduction <add>, %82, %cst_39 [1] : vector<8x128xf32> to vector<8xf32>
      %84 = vector.shape_cast %83 : vector<8xf32> to vector<8x1xf32>
      %85 = arith.subf %71, %84 : vector<8x1xf32>
      %cst_40 = arith.constant 2.000000e-01 : f32
      %86 = vector.broadcast %cst_40 : f32 to vector<8x1xf32>
      %87 = arith.cmpf ogt, %85, %86 : vector<8x1xf32>
      %88 = arith.andi %69, %87 : vector<8x1xi1>
      %cst_41 = arith.constant 2.76310205 : f32
      %89 = vector.broadcast %cst_41 : f32 to vector<8x1xf32>
      %90 = arith.subf %89, %50 : vector<8x1xf32>
      %91 = math.exp %90 : vector<8x1xf32>
      %92 = math.exp %85 : vector<8x1xf32>
      %93 = arith.addf %91, %92 : vector<8x1xf32>
      %94 = arith.mulf %50, %93 : vector<8x1xf32>
      %cst_42 = arith.constant 1.000000e+00 : f32
      %cst_43 = arith.constant 0.000000e+00 : f32
      %95 = vector.broadcast %cst_42 : f32 to vector<8x1xf32>
      %96 = vector.broadcast %cst_43 : f32 to vector<8x1xf32>
      %97 = arith.select %69, %95, %96 : vector<8x1xi1>, vector<8x1xf32>
      %98 = vector.shape_cast %97 : vector<8x1xf32> to vector<1x8x1xf32>
      %cst_44 = arith.constant dense<0.000000e+00> : vector<1xf32>
      %99 = vector.multi_reduction <add>, %98, %cst_44 [1, 2] : vector<1x8x1xf32> to vector<1xf32>
      %100 = vector.shape_cast %99 : vector<1xf32> to vector<1x1x1xf32>
      %101 = vector.extract %100[0, 0, 0] : f32 from vector<1x1x1xf32>
      %102 = vector.broadcast %101 : f32 to vector<1x1xf32>
      %cst_45 = arith.constant 1.000000e+00 : f32
      %cst_46 = arith.constant 0.000000e+00 : f32
      %103 = vector.broadcast %cst_45 : f32 to vector<8x1xf32>
      %104 = vector.broadcast %cst_46 : f32 to vector<8x1xf32>
      %105 = arith.select %88, %103, %104 : vector<8x1xi1>, vector<8x1xf32>
      %106 = vector.shape_cast %105 : vector<8x1xf32> to vector<1x8x1xf32>
      %cst_47 = arith.constant dense<0.000000e+00> : vector<1xf32>
      %107 = vector.multi_reduction <add>, %106, %cst_47 [1, 2] : vector<1x8x1xf32> to vector<1xf32>
      %108 = vector.shape_cast %107 : vector<1xf32> to vector<1x1x1xf32>
      %109 = vector.extract %108[0, 0, 0] : f32 from vector<1x1x1xf32>
      %110 = vector.broadcast %109 : f32 to vector<1x1xf32>
      %cst_48 = arith.constant 0.000000e+00 : f32
      %111 = vector.broadcast %cst_48 : f32 to vector<8x1xf32>
      %112 = arith.select %88, %94, %111 : vector<8x1xi1>, vector<8x1xf32>
      %113 = vector.shape_cast %112 : vector<8x1xf32> to vector<1x8x1xf32>
      %cst_49 = arith.constant dense<0.000000e+00> : vector<1xf32>
      %114 = vector.multi_reduction <add>, %113, %cst_49 [1, 2] : vector<1x8x1xf32> to vector<1xf32>
      %115 = vector.shape_cast %114 : vector<1xf32> to vector<1x1x1xf32>
      %116 = vector.extract %115[0, 0, 0] : f32 from vector<1x1x1xf32>
      %117 = vector.broadcast %116 : f32 to vector<1x1xf32>
      %118 = tpu.iota {dimensions = array<i32: 1>} : vector<8x128xi32>
      %c0_i32_50 = arith.constant 0 : i32
      %119 = vector.broadcast %c0_i32_50 : i32 to vector<8x128xi32>
      %120 = arith.cmpi eq, %118, %119 : vector<8x128xi32>
      %cst_51 = arith.constant 0.000000e+00 : f32
      %121 = vector.shape_cast %102 : vector<1x1xf32> to vector<1x1xf32>
      %122 = vector.broadcast %121 : vector<1x1xf32> to vector<8x128xf32>
      %123 = vector.broadcast %cst_51 : f32 to vector<8x128xf32>
      %124 = arith.select %120, %122, %123 : vector<8x128xi1>, vector<8x128xf32>
      %c1_i32 = arith.constant 1 : i32
      %125 = vector.broadcast %c1_i32 : i32 to vector<8x128xi32>
      %126 = arith.cmpi eq, %118, %125 : vector<8x128xi32>
      %cst_52 = arith.constant 0.000000e+00 : f32
      %127 = vector.shape_cast %110 : vector<1x1xf32> to vector<1x1xf32>
      %128 = vector.broadcast %127 : vector<1x1xf32> to vector<8x128xf32>
      %129 = vector.broadcast %cst_52 : f32 to vector<8x128xf32>
      %130 = arith.select %126, %128, %129 : vector<8x128xi1>, vector<8x128xf32>
      %131 = arith.addf %124, %130 : vector<8x128xf32>
      %c2_i32_53 = arith.constant 2 : i32
      %132 = vector.broadcast %c2_i32_53 : i32 to vector<8x128xi32>
      %133 = arith.cmpi eq, %118, %132 : vector<8x128xi32>
      %cst_54 = arith.constant 0.000000e+00 : f32
      %134 = vector.shape_cast %117 : vector<1x1xf32> to vector<1x1xf32>
      %135 = vector.broadcast %134 : vector<1x1xf32> to vector<8x128xf32>
      %136 = vector.broadcast %cst_54 : f32 to vector<8x128xf32>
      %137 = arith.select %133, %135, %136 : vector<8x128xi1>, vector<8x128xf32>
      %138 = arith.addf %131, %137 : vector<8x128xf32>
      %c0_55 = arith.constant 0 : index
      %c0_56 = arith.constant 0 : index
      %139 = vector.load %arg7[%c0_55, %c0_56] : memref<8x128xf32, #tpu.memory_space<vmem>>, vector<8x128xf32>
      tpu.vector_store %arg7[%c0_55, %c0_56], %138 {strides = array<i32>} : memref<8x128xf32, #tpu.memory_space<vmem>>, vector<8x128xf32>,
    } else {
    }
    return
  }
  func.func @transform_0(%arg0: i32, %arg1: i32) -> (i32, i32) {
    %c0_i32 = arith.constant 0 : i32
    return %arg0, %arg1 : i32, i32
  }
  func.func @transform_1(%arg0: i32, %arg1: i32) -> (i32, i32) {
    %c0_i32 = arith.constant 0 : i32
    return %arg0, %arg1 : i32, i32
  }
  func.func @transform_2(%arg0: i32, %arg1: i32) -> (i32, i32) {
    %c0_i32 = arith.constant 0 : i32
    %c0_i32_0 = arith.constant 0 : i32
    return %arg1, %c0_i32 : i32, i32
  }
  func.func @transform_3(%arg0: i32, %arg1: i32) -> (i32, i32) {
    %c0_i32 = arith.constant 0 : i32
    %c0_i32_0 = arith.constant 0 : i32
    %c0_i32_1 = arith.constant 0 : i32
    return %c0_i32, %c0_i32_0 : i32, i32
  }
  func.func @transform_4(%arg0: i32, %arg1: i32) -> (i32, i32) {
    %c0_i32 = arith.constant 0 : i32
    %c0_i32_0 = arith.constant 0 : i32
    return %arg0, %c0_i32 : i32, i32
  }
  func.func @transform_5(%arg0: i32, %arg1: i32) -> (i32, i32) {
    %c0_i32 = arith.constant 0 : i32
    %c0_i32_0 = arith.constant 0 : i32
    return %arg0, %c0_i32 : i32, i32
  }
}

</mosaic_0001>

<bundles_post_ra>
// kernel: tpu_custom_call.1
= control target key start
LH: loop header
LB: loop body
LE: loop exit
PB: predicated region body
PF: predicated region fallthrough
CT: control target
= control target key end

     0   :  { %11 = vsyncpa [#allocation4], 0  ;;  %s2004_s0 = inlined_call_operand.hbm [shape: bf16[8,1024], index: 0, kind: input, shape index: {}]   ;;  %s2005_s1 = inlined_call_operand.hbm [shape: bf16[8,1024], index: 1, kind: input, shape index: {}]   ;;  %s2006_s2 = inlined_call_operand.hbm [shape: bf16[1024,128], index: 2, kind: input, shape index: {}]   ;;  %s2007_s3 = inlined_call_operand.vmem [shape: f32[1,128], index: 3, kind: input, shape index: {}]   ;;  %s2008_s4 = inlined_call_operand.hbm [shape: f32[8,128], index: 4, kind: output, shape index: {0}]   ;;  %s2009_s5 = inlined_call_operand.hbm [shape: f32[8,128], index: 5, kind: output, shape index: {1}]  }
   0x1   :  { %12 = vsyncpa [#allocation7], 0 }
   0x2   :  { %13 = vsyncpa [#allocation5], 0 }
   0x3   :  { %14 = vsyncpa [#allocation11], 0  ;;  %s1618_s18 = smov [#allocation6]   ;;  %s1619_s20 = smov [#allocation3]  }
   0x4   :  { %s31_s19 = sshll.u32 %s1618_s18, 4  ;;  %s21_s21 = sshll.u32 %s1619_s20, 4  ;;  %s32_s19 = int_to_ptr.vmem [resolvable:$true] %s31_s19  ;;  %s22_s21 = int_to_ptr.vmem [resolvable:$true] %s21_s21 }
   0x5   :  { %s1500_s24 = scalar_lea.hbm %s2005_s1, 512 }
   0x6   :  { %p1501_p0 = scmp.ne.s32.totalorder %s2005_s1, %s1500_s24  ;;  %p1504_p1 = scmp.lt.u32.totalorder %s1500_s24, %s2005_s1 }
   0x8   :  { %p1506_p2 = pnand %p1504_p1, %p1501_p0 }
   0xa   :  { %1509 = shalt.err (!%p1506_p2)
}
   0xb   :  { %s1510_s29 = scalar_lea.vmem %s32_s19, 512  ;;  %p1515_p4 = scmp.lt.s32.totalorder %s32_s19, %s32_s19 }
   0xc   :  { %p1511_p3 = scmp.ne.s32.totalorder %s32_s19, %s1510_s29  ;;  %p1516_p5 = scmp.lt.s32.totalorder %s1510_s29, %s1510_s29 }
   0xe   :  { %p1517_p6 = por %p1516_p5, %p1515_p4 }
  0x10   :  { %p1518_p7 = pnand %p1517_p6, %p1511_p3 }
  0x12   :  { %1521 = shalt.err (!%p1518_p7)
}
  0x13   :  { %34 = dma.hbm_to_vmem [thread:$0]  %s2005_s1, 512, %s32_s19, [#allocation7]  }
  0x14   :  { %s1522_s9 = scalar_lea.hbm %s2004_s0, 512 }
  0x15   :  { %p1523_p8 = scmp.ne.s32.totalorder %s2004_s0, %s1522_s9  ;;  %p1526_p9 = scmp.lt.u32.totalorder %s1522_s9, %s2004_s0 }
  0x17   :  { %p1528_p10 = pnand %p1526_p9, %p1523_p8 }
  0x19   :  { %1531 = shalt.err (!%p1528_p10)
}
  0x1a   :  { %s1532_s14 = scalar_lea.vmem %s22_s21, 512  ;;  %p1537_p12 = scmp.lt.s32.totalorder %s22_s21, %s22_s21 }
  0x1b   :  { %p1533_p11 = scmp.ne.s32.totalorder %s22_s21, %s1532_s14  ;;  %p1538_p13 = scmp.lt.s32.totalorder %s1532_s14, %s1532_s14 }
  0x1d   :  { %p1539_p0 = por %p1538_p13, %p1537_p12 }
  0x1f   :  { %p1540_p1 = pnand %p1539_p0, %p1533_p11 }
  0x21   :  { %1543 = shalt.err (!%p1540_p1)
}
  0x22   :  { %24 = dma.hbm_to_vmem [thread:$0]  %s2004_s0, 512, %s22_s21, [#allocation4]  }
  0x23   :  { %s1620_s16 = smov [#allocation8]   ;;  %s1544_s20 = scalar_lea.hbm %s2006_s2, 8192 }
  0x24   :  { %s40_s17 = sshll.u32 %s1620_s16, 4  ;;  %p1545_p2 = scmp.ne.s32.totalorder %s2006_s2, %s1544_s20  ;;  %s41_s17 = int_to_ptr.vmem [resolvable:$true] %s40_s17 }
  0x25   :  { %p1548_p3 = scmp.lt.u32.totalorder %s1544_s20, %s2006_s2 }
  0x27   :  { %p1550_p4 = pnand %p1548_p3, %p1545_p2 }
  0x29   :  { %1553 = shalt.err (!%p1550_p4)
}
  0x2a   :  { %s1554_s26 = scalar_lea.vmem %s41_s17, 8192  ;;  %p1559_p6 = scmp.lt.s32.totalorder %s41_s17, %s41_s17 }
  0x2b   :  { %p1555_p5 = scmp.ne.s32.totalorder %s41_s17, %s1554_s26  ;;  %p1560_p7 = scmp.lt.s32.totalorder %s1554_s26, %s1554_s26 }
  0x2d   :  { %p1561_p8 = por %p1560_p7, %p1559_p6 }
  0x2f   :  { %p1562_p9 = pnand %p1561_p8, %p1555_p5 }
  0x31   :  { %1565 = shalt.err (!%p1562_p9)
}
  0x32   :  { %s1621_s0 = smov 64   ;;  %s1622_s21 = smov 4  }
  0x33   :  { %46 = dma.hbm_to_vmem [thread:$0]  %s2006_s2, 8192, %s41_s17, [#allocation7], %s1621_s0, %s1621_s0, %s1622_s21  }
  0x34   :  { %1610 = dma.done.wait [#allocation4], 512  }
  0x35   :  { %1611 = vsyncadd [#allocation4], 4294966784 }
  0x36   :  { %1612 = dma.done.wait [#allocation7], 8704  }
  0x37   :  { %1613 = vsyncadd [#allocation7], 4294958592  ;;  %v1692_v0 = vld [vmem:[#allocation8 + $0x40] sm:$0xff]   ;;  %v1703_v4 = vld [vmem:[#allocation8 + $0x48] sm:$0xff]   ;;  %vm1058_vm6 = vcmask 7168  }
  0x38   :  { %v1694_v1 = vld [vmem:[#allocation8 + $0xc0] sm:$0xff]   ;;  %1214 = vmatprep.subr.bf16.mxu0 %v1692_v0  ;;  %v1706_v5 = vld [vmem:[#allocation8 + $0xc8] sm:$0xff]   ;;  %v1715_v8 = vld [vmem:[#allocation8 + $0x50] sm:$0xff]  }
  0x39   :  { %v1697_v2 = vld [vmem:[#allocation8] sm:$0xff]   ;;  %1236 = vmatprep.subr.bf16.mxu1 %v1694_v1  ;;  %v1709_v6 = vld [vmem:[#allocation8 + $0x8] sm:$0xff]   ;;  %v1718_v9 = vld [vmem:[#allocation8 + $0xd0] sm:$0xff]  }
  0x3a   :  { %v1700_v3 = vld [vmem:[#allocation8 + $0x80] sm:$0xff]   ;;  %1215 = vmatpush3.bf16.msra.mxu0 %v1697_v2  ;;  %v1712_v7 = vld [vmem:[#allocation8 + $0x88] sm:$0xff]   ;;  %v1721_v10 = vld [vmem:[#allocation8 + $0x10] sm:$0xff]  }
  0x3b   :  { %1237 = vmatpush3.bf16.msra.mxu1 %v1700_v3  ;;  %1216 = vmatprep.subr.bf16.mxu0 %v1703_v4  ;;  %v1724_v11 = vld [vmem:[#allocation8 + $0x90] sm:$0xff]   ;;  %v1727_v12 = vld [vmem:[#allocation8 + $0x58] sm:$0xff]   ;;  %v1739_v16 = vld [vmem:[#allocation8 + $0x60] sm:$0xff]  }
  0x3c   :  { %1238 = vmatprep.subr.bf16.mxu1 %v1706_v5  ;;  %v1730_v13 = vld [vmem:[#allocation8 + $0xd8] sm:$0xff]   ;;  %v1742_v17 = vld [vmem:[#allocation8 + $0xe0] sm:$0xff]   ;;  %v1751_v20 = vld [vmem:[#allocation8 + $0x68] sm:$0xff]  }
  0x3d   :  { %v1733_v14 = vld [vmem:[#allocation8 + $0x18] sm:$0xff]   ;;  %v1745_v18 = vld [vmem:[#allocation8 + $0x20] sm:$0xff]   ;;  %v1754_v21 = vld [vmem:[#allocation8 + $0xe8] sm:$0xff]  }
  0x3e   :  { %1217 = vmatpush3.bf16.msra.mxu0 %v1709_v6  ;;  %v1736_v15 = vld [vmem:[#allocation8 + $0x98] sm:$0xff]   ;;  %v1748_v19 = vld [vmem:[#allocation8 + $0xa0] sm:$0xff]   ;;  %v1757_v22 = vld [vmem:[#allocation8 + $0x28] sm:$0xff]  }
  0x3f   :  { %1239 = vmatpush3.bf16.msra.mxu1 %v1712_v7  ;;  %1218 = vmatprep.subr.bf16.mxu0 %v1715_v8  ;;  %v1760_v23 = vld [vmem:[#allocation8 + $0xa8] sm:$0xff]   ;;  %v1763_v24 = vld [vmem:[#allocation8 + $0x70] sm:$0xff]   ;;  %v1775_v28 = vld [vmem:[#allocation8 + $0x78] sm:$0xff]  }
  0x40   :  { %1240 = vmatprep.subr.bf16.mxu1 %v1718_v9  ;;  %v1766_v25 = vld [vmem:[#allocation8 + $0xf0] sm:$0xff]   ;;  %v1778_v29 = vld [vmem:[#allocation8 + $0xf8] sm:$0xff]   ;;  %v195_v32 = vld [vmem:[#allocation3] sm:$0xff] }
  0x41   :  { %v1769_v26 = vld [vmem:[#allocation8 + $0x30] sm:$0xff]   ;;  %v1781_v30 = vld [vmem:[#allocation8 + $0x38] sm:$0xff]   ;;  %v196_v33 = vld [vmem:[#allocation3 + $0x8] sm:$0xff]  ;;  %v1133_v34 = vcombine.low %v195_v32, %v195_v32  ;;  %v1134_v35 = vcombine.high %v195_v32, %v195_v32 }
  0x42   :  { %1219 = vmatpush3.bf16.msra.mxu0 %v1721_v10  ;;  %v1772_v27 = vld [vmem:[#allocation8 + $0xb0] sm:$0xff]   ;;  %v1784_v31 = vld [vmem:[#allocation8 + $0xb8] sm:$0xff]   ;;  %v1135_v36 = vcombine.low %v196_v33, %v196_v33  ;;  %v1136_v37 = vcombine.high %v196_v33, %v196_v33  ;;  %v1788_v38 = vld [vmem:[#allocation8 + $0x140] sm:$0xff]  }
  0x43   :  { %1241 = vmatpush3.bf16.msra.mxu1 %v1724_v11  ;;  %1220 = vmatprep.subr.bf16.mxu0 %v1727_v12  ;;  %v1790_v39 = vld [vmem:[#allocation8 + $0x1c0] sm:$0xff]   ;;  %v1798_v42 = vld [vmem:[#allocation8 + $0x148] sm:$0xff]   ;;  %v1810_v46 = vld [vmem:[#allocation8 + $0x150] sm:$0xff]  }
  0x44   :  { %1242 = vmatprep.subr.bf16.mxu1 %v1730_v13  ;;  %643 = vmatprep.mubr.bf16.mxu0 %v1134_v35  ;;  %v1792_v40 = vld [vmem:[#allocation8 + $0x100] sm:$0xff]   ;;  %v1802_v43 = vld [vmem:[#allocation8 + $0x1c8] sm:$0xff]   ;;  %v1814_v47 = vld [vmem:[#allocation8 + $0x1d0] sm:$0xff]  }
  0x45   :  { %683 = vmatprep.mubr.bf16.mxu1 %v1136_v37  ;;  %v1794_v41 = vld [vmem:[#allocation8 + $0x180] sm:$0xff]   ;;  %v1805_v44 = vld [vmem:[#allocation8 + $0x108] sm:$0xff]   ;;  %v1817_v48 = vld [vmem:[#allocation8 + $0x110] sm:$0xff]  }
  0x46   :  { %1221 = vmatpush3.bf16.msra.mxu0 %v1733_v14  ;;  %v1808_v45 = vld [vmem:[#allocation8 + $0x188] sm:$0xff]   ;;  %v1820_v49 = vld [vmem:[#allocation8 + $0x190] sm:$0xff]   ;;  %v1822_v50 = vld [vmem:[#allocation8 + $0x158] sm:$0xff]  }
  0x47   :  { %1243 = vmatpush3.bf16.msra.mxu1 %v1736_v15  ;;  %1222 = vmatprep.subr.bf16.mxu0 %v1739_v16  ;;  %v1826_v51 = vld [vmem:[#allocation8 + $0x1d8] sm:$0xff]   ;;  %v1834_v54 = vld [vmem:[#allocation8 + $0x160] sm:$0xff]   ;;  %v1846_v58 = vld [vmem:[#allocation8 + $0x168] sm:$0xff]  }
  0x48   :  { %1244 = vmatprep.subr.bf16.mxu1 %v1742_v17  ;;  %v1829_v52 = vld [vmem:[#allocation8 + $0x118] sm:$0xff]   ;;  %v1838_v55 = vld [vmem:[#allocation8 + $0x1e0] sm:$0xff]   ;;  %v1850_v59 = vld [vmem:[#allocation8 + $0x1e8] sm:$0xff]  }
  0x49   :  { %v1832_v53 = vld [vmem:[#allocation8 + $0x198] sm:$0xff]   ;;  %v1841_v56 = vld [vmem:[#allocation8 + $0x120] sm:$0xff]   ;;  %v1853_v60 = vld [vmem:[#allocation8 + $0x128] sm:$0xff]  }
  0x4a   :  { %1223 = vmatpush3.bf16.msra.mxu0 %v1745_v18  ;;  %v1844_v57 = vld [vmem:[#allocation8 + $0x1a0] sm:$0xff]   ;;  %2016 = vst [vmem:[#allocation16_spill] sm:$0xff] %v1853_v60  ;;  %v1856_v61 = vld [vmem:[#allocation8 + $0x1a8] sm:$0xff]   ;;  %v1858_v62 = vld [vmem:[#allocation8 + $0x170] sm:$0xff]  }
  0x4b   :  { %1245 = vmatpush3.bf16.msra.mxu1 %v1748_v19  ;;  %1224 = vmatprep.subr.bf16.mxu0 %v1751_v20  ;;  %2017 = vst [vmem:[#allocation17_spill] sm:$0xff] %v1856_v61  ;;  %2018 = vst [vmem:[#allocation18_spill] sm:$0xff] %v1858_v62  ;;  %v1862_v63 = vld [vmem:[#allocation8 + $0x1f0] sm:$0xff]   ;;  %v1874_v35 = vld [vmem:[#allocation8 + $0x1f8] sm:$0xff]  }
  0x4c   :  { %1246 = vmatprep.subr.bf16.mxu1 %v1754_v21  ;;  %2019 = vst [vmem:[#allocation19_spill] sm:$0xff] %v1862_v63  ;;  %v1865_v32 = vld [vmem:[#allocation8 + $0x130] sm:$0xff]   ;;  %v1880_v37 = vld [vmem:[#allocation8 + $0x1b8] sm:$0xff]  }
  0x4d   :  { %2020 = vst [vmem:[#allocation20_spill] sm:$0xff] %v1865_v32  ;;  %v1868_v33 = vld [vmem:[#allocation8 + $0x1b0] sm:$0xff]  }
  0x4e   :  { %1225 = vmatpush3.bf16.msra.mxu0 %v1757_v22  ;;  %2021 = vst [vmem:[#allocation21_spill] sm:$0xff] %v1868_v33 }
  0x4f   :  { %1247 = vmatpush3.bf16.msra.mxu1 %v1760_v23  ;;  %1226 = vmatprep.subr.bf16.mxu0 %v1763_v24 }
  0x50   :  { %1248 = vmatprep.subr.bf16.mxu1 %v1766_v25 }
  0x52   :  { %1227 = vmatpush3.bf16.msra.mxu0 %v1769_v26 }
  0x53   :  { %1249 = vmatpush3.bf16.msra.mxu1 %v1772_v27  ;;  %1228 = vmatprep.subr.bf16.mxu0 %v1775_v28 }
  0x54   :  { %1250 = vmatprep.subr.bf16.mxu1 %v1778_v29 }
  0x56   :  { %1229 = vmatpush3.bf16.msra.mxu0 %v1781_v30 }
  0x57   :  { %1251 = vmatpush3.bf16.msra.mxu1 %v1784_v31  ;;  %1258 = vmatprep.subr.bf16.mxu0 %v1788_v38 }
  0x58   :  { %1280 = vmatprep.subr.bf16.mxu1 %v1790_v39 }
  0x59   :  { %644 = vmatmul.mubr.bf16.vlgmr.msra.gmra.mrb[0].mxu0 %v1133_v34  ;;  %v1870_v34 = vld [vmem:[#allocation8 + $0x178] sm:$0xff]  }
  0x5a   :  { %684 = vmatmul.mubr.bf16.vlgmr.msra.gmra.mrb[0].mxu1 %v1135_v36  ;;  %1259 = vmatpush3.bf16.msra.mxu0 %v1792_v40  ;;  %v1877_v36 = vld [vmem:[#allocation8 + $0x138] sm:$0xff]  }
  0x5b   :  { %1281 = vmatpush3.bf16.msra.mxu1 %v1794_v41  ;;  %1260 = vmatprep.subr.bf16.mxu0 %v1798_v42 }
  0x5c   :  { %1282 = vmatprep.subr.bf16.mxu1 %v1802_v43 }
  0x5e   :  { %1261 = vmatpush3.bf16.msra.mxu0 %v1805_v44 }
  0x5f   :  { %1283 = vmatpush3.bf16.msra.mxu1 %v1808_v45  ;;  %1262 = vmatprep.subr.bf16.mxu0 %v1810_v46 }
  0x60   :  { %1284 = vmatprep.subr.bf16.mxu1 %v1814_v47 }
  0x62   :  { %1263 = vmatpush3.bf16.msra.mxu0 %v1817_v48 }
  0x63   :  { %1285 = vmatpush3.bf16.msra.mxu1 %v1820_v49  ;;  %1264 = vmatprep.subr.bf16.mxu0 %v1822_v50 }
  0x64   :  { %1286 = vmatprep.subr.bf16.mxu1 %v1826_v51 }
  0x66   :  { %1265 = vmatpush3.bf16.msra.mxu0 %v1829_v52 }
  0x67   :  { %1287 = vmatpush3.bf16.msra.mxu1 %v1832_v53  ;;  %1266 = vmatprep.subr.bf16.mxu0 %v1834_v54 }
  0x68   :  { %1288 = vmatprep.subr.bf16.mxu1 %v1838_v55 }
  0x6a   :  { %1267 = vmatpush3.bf16.msra.mxu0 %v1841_v56 }
  0x6b   :  { %1289 = vmatpush3.bf16.msra.mxu1 %v1844_v57  ;;  %1268 = vmatprep.subr.bf16.mxu0 %v1846_v58 }
  0x6c   :  { %1290 = vmatprep.subr.bf16.mxu1 %v1850_v59 }
  0x6e   :  { %1269 = vmatpush3.bf16.msra.mxu0 %v1853_v60  ;;  %v198_v60 = vld [vmem:[#allocation3 + $0x18] sm:$0xff] }
  0x6f   :  { %1291 = vmatpush3.bf16.msra.mxu1 %v1856_v61  ;;  %1270 = vmatprep.subr.bf16.mxu0 %v1858_v62  ;;  %v197_v62 = vld [vmem:[#allocation3 + $0x10] sm:$0xff] }
  0x70   :  { %1292 = vmatprep.subr.bf16.mxu1 %v1862_v63  ;;  %v1137_v63 = vcombine.low %v197_v62, %v197_v62  ;;  %v1138_v61 = vcombine.high %v197_v62, %v197_v62 }
  0x72   :  { %1271 = vmatpush3.bf16.msra.mxu0 %v1865_v32  ;;  %v1139_v32 = vcombine.low %v198_v60, %v198_v60  ;;  %723 = vmatprep.mubr.bf16.mxu0 %v1138_v61 }
  0x73   :  { %1293 = vmatpush3.bf16.msra.mxu1 %v1868_v33  ;;  %1272 = vmatprep.subr.bf16.mxu0 %v1870_v34  ;;  %v1140_v33 = vcombine.high %v198_v60, %v198_v60 }
  0x74   :  { %1294 = vmatprep.subr.bf16.mxu1 %v1874_v35 }
  0x75   :  { %763 = vmatprep.mubr.bf16.mxu1 %v1140_v33 }
  0x76   :  { %1273 = vmatpush3.bf16.msra.mxu0 %v1877_v36 }
  0x77   :  { %1295 = vmatpush3.bf16.msra.mxu1 %v1880_v37  ;;  %1302 = vmatprep.subr.bf16.mxu0 %v1692_v0  ;;  %v774_v0 = vld [vmem:[#allocation6] sm:$0xff] }
  0x78   :  { %1324 = vmatprep.subr.bf16.mxu1 %v1694_v1  ;;  %v775_v1 = vld [vmem:[#allocation6 + $0x8] sm:$0xff] }
  0x79   :  { %724 = vmatmul.mubr.bf16.vlgmr.msra.gmra.mrb[4].mxu0 %v1137_v63 }
  0x7a   :  { %764 = vmatmul.mubr.bf16.vlgmr.msra.gmra.mrb[4].mxu1 %v1139_v32  ;;  %1303 = vmatpush3.bf16.msra.mxu0 %v1697_v2  ;;  %v776_v2 = vld [vmem:[#allocation6 + $0x10] sm:$0xff] }
  0x7b   :  { %1325 = vmatpush3.bf16.msra.mxu1 %v1700_v3  ;;  %1304 = vmatprep.subr.bf16.mxu0 %v1703_v4  ;;  %v1205_v3 = vcombine.low %v774_v0, %v774_v0  ;;  %v1206_v4 = vcombine.high %v774_v0, %v774_v0 }
  0x7c   :  { %1326 = vmatprep.subr.bf16.mxu1 %v1706_v5  ;;  %v1207_v5 = vcombine.low %v775_v1, %v775_v1 }
  0x7d   :  { %838 = vmatprep.mubr.bf16.mxu0 %v1206_v4 }
  0x7e   :  { %1305 = vmatpush3.bf16.msra.mxu0 %v1709_v6  ;;  %v1208_v6 = vcombine.high %v775_v1, %v775_v1 }
  0x7f   :  { %1327 = vmatpush3.bf16.msra.mxu1 %v1712_v7  ;;  %1306 = vmatprep.subr.bf16.mxu0 %v1715_v8  ;;  %v777_v7 = vld [vmem:[#allocation6 + $0x18] sm:$0xff]  ;;  %v1210_v8 = vcombine.high %v776_v2, %v776_v2 }
  0x80   :  { %1328 = vmatprep.subr.bf16.mxu1 %v1718_v9  ;;  %878 = vmatprep.mubr.bf16.mxu1 %v1208_v6  ;;  %v1212_v9 = vcombine.high %v777_v7, %v777_v7 }
  0x82   :  { %1307 = vmatpush3.bf16.msra.mxu0 %v1721_v10  ;;  %v2022_v10 = vld [vmem:[#allocation16_spill] sm:$0xff] }
  0x83   :  { %1329 = vmatpush3.bf16.msra.mxu1 %v1724_v11  ;;  %1308 = vmatprep.subr.bf16.mxu0 %v1727_v12  ;;  %v2023_v11 = vld [vmem:[#allocation17_spill] sm:$0xff]  ;;  %v2024_v12 = vld [vmem:[#allocation18_spill] sm:$0xff] }
  0x84   :  { %1330 = vmatprep.subr.bf16.mxu1 %v1730_v13  ;;  %v2025_v13 = vld [vmem:[#allocation19_spill] sm:$0xff] }
  0x86   :  { %1309 = vmatpush3.bf16.msra.mxu0 %v1733_v14  ;;  %v2026_v14 = vld [vmem:[#allocation20_spill] sm:$0xff] }
  0x87   :  { %1331 = vmatpush3.bf16.msra.mxu1 %v1736_v15  ;;  %1310 = vmatprep.subr.bf16.mxu0 %v1739_v16  ;;  %v2027_v15 = vld [vmem:[#allocation21_spill] sm:$0xff]  ;;  %v1209_v16 = vcombine.low %v776_v2, %v776_v2 }
  0x88   :  { %1332 = vmatprep.subr.bf16.mxu1 %v1742_v17  ;;  %v1211_v17 = vcombine.low %v777_v7, %v777_v7 }
  0x8a   :  { %1311 = vmatpush3.bf16.msra.mxu0 %v1745_v18 }
  0x8b   :  { %1333 = vmatpush3.bf16.msra.mxu1 %v1748_v19  ;;  %1312 = vmatprep.subr.bf16.mxu0 %v1751_v20 }
  0x8c   :  { %1334 = vmatprep.subr.bf16.mxu1 %v1754_v21 }
  0x8e   :  { %1313 = vmatpush3.bf16.msra.mxu0 %v1757_v22 }
  0x8f   :  { %1335 = vmatpush3.bf16.msra.mxu1 %v1760_v23  ;;  %1314 = vmatprep.subr.bf16.mxu0 %v1763_v24 }
  0x90   :  { %1336 = vmatprep.subr.bf16.mxu1 %v1766_v25 }
  0x92   :  { %1315 = vmatpush3.bf16.msra.mxu0 %v1769_v26 }
  0x93   :  { %1337 = vmatpush3.bf16.msra.mxu1 %v1772_v27  ;;  %1316 = vmatprep.subr.bf16.mxu0 %v1775_v28 }
  0x94   :  { %1338 = vmatprep.subr.bf16.mxu1 %v1778_v29 }
  0x96   :  { %1317 = vmatpush3.bf16.msra.mxu0 %v1781_v30 }
  0x97   :  { %1339 = vmatpush3.bf16.msra.mxu1 %v1784_v31  ;;  %1346 = vmatprep.subr.bf16.mxu0 %v1788_v38 }
  0x98   :  { %1368 = vmatprep.subr.bf16.mxu1 %v1790_v39  ;;  %v983_v39 = vlaneseq }
  0x99   :  { %839 = vmatmul.mubr.bf16.vlgmr.msra.gmra.mrb[8].mxu0 %v1205_v3 }
  0x9a   :  { %879 = vmatmul.mubr.bf16.vlgmr.msra.gmra.mrb[8].mxu1 %v1207_v5  ;;  %1347 = vmatpush3.bf16.msra.mxu0 %v1792_v40 }
  0x9b   :  { %1369 = vmatpush3.bf16.msra.mxu1 %v1794_v41  ;;  %1348 = vmatprep.subr.bf16.mxu0 %v1798_v42 }
  0x9c   :  { %1370 = vmatprep.subr.bf16.mxu1 %v1802_v43  ;;  %918 = vmatprep.mubr.bf16.mxu0 %v1210_v8 }
  0x9d   :  { %958 = vmatprep.mubr.bf16.mxu1 %v1212_v9 }
  0x9e   :  { %1349 = vmatpush3.bf16.msra.mxu0 %v1805_v44 }
  0x9f   :  { %1371 = vmatpush3.bf16.msra.mxu1 %v1808_v45  ;;  %1350 = vmatprep.subr.bf16.mxu0 %v1810_v46 }
  0xa0   :  { %1372 = vmatprep.subr.bf16.mxu1 %v1814_v47  ;;  %v1949_v47 = vand.u32 127, %v983_v39 }
  0xa2   :  { %1351 = vmatpush3.bf16.msra.mxu0 %v1817_v48  ;;  %vm985_vm0 = vcmp.lt.s32.totalorder %v1949_v47, 16 }
  0xa3   :  { %1373 = vmatpush3.bf16.msra.mxu1 %v1820_v49  ;;  %1352 = vmatprep.subr.bf16.mxu0 %v1822_v50  ;;  %v1213_v49 = vld [vmem:[%s2007_s3] ss:$0 sm:$0xff]  ;;  %s1624_s3 = smov [#allocation9]  }
  0xa4   :  { %1374 = vmatprep.subr.bf16.mxu1 %v1826_v51  ;;  %s1109_s30 = sshll.u32 %s1624_s3, 4  ;;  %s1110_s30 = int_to_ptr.vmem [resolvable:$true] %s1109_s30 }
  0xa5   :  { %s1566_s6 = scalar_lea.vmem %s1110_s30, 128  ;;  %p1571_p11 = scmp.lt.s32.totalorder %s1110_s30, %s1110_s30 }
  0xa6   :  { %1353 = vmatpush3.bf16.msra.mxu0 %v1829_v52  ;;  %p1567_p10 = scmp.ne.s32.totalorder %s1110_s30, %s1566_s6  ;;  %p1572_p12 = scmp.lt.s32.totalorder %s1566_s6, %s1566_s6 }
  0xa7   :  { %1375 = vmatpush3.bf16.msra.mxu1 %v1832_v53  ;;  %1354 = vmatprep.subr.bf16.mxu0 %v1834_v54 }
  0xa8   :  { %1376 = vmatprep.subr.bf16.mxu1 %v1838_v55  ;;  %p1573_p13 = por %p1572_p12, %p1571_p11 }
  0xaa   :  { %1355 = vmatpush3.bf16.msra.mxu0 %v1841_v56  ;;  %p1574_p0 = pnand %p1573_p13, %p1567_p10 }
  0xab   :  { %1377 = vmatpush3.bf16.msra.mxu1 %v1844_v57  ;;  %1356 = vmatprep.subr.bf16.mxu0 %v1846_v58 }
  0xac   :  { %1378 = vmatprep.subr.bf16.mxu1 %v1850_v59 }
  0xae   :  { %1357 = vmatpush3.bf16.msra.mxu0 %v2022_v10 }
  0xaf   :  { %1379 = vmatpush3.bf16.msra.mxu1 %v2023_v11  ;;  %1358 = vmatprep.subr.bf16.mxu0 %v2024_v12 }
  0xb0   :  { %1380 = vmatprep.subr.bf16.mxu1 %v2025_v13 }
  0xb2   :  { %1359 = vmatpush3.bf16.msra.mxu0 %v2026_v14 }
  0xb3   :  { %1381 = vmatpush3.bf16.msra.mxu1 %v2027_v15  ;;  %1360 = vmatprep.subr.bf16.mxu0 %v1870_v34 }
  0xb4   :  { %1382 = vmatprep.subr.bf16.mxu1 %v1874_v35 }
  0xb6   :  { %1361 = vmatpush3.bf16.msra.mxu0 %v1877_v36 }
  0xb7   :  { %1383 = vmatpush3.bf16.msra.mxu1 %v1880_v37 }
  0xb9   :  { %919 = vmatmul.mubr.bf16.vlgmr.msra.gmra.mrb[12].mxu0 %v1209_v16 }
  0xba   :  { %959 = vmatmul.mubr.bf16.vlgmr.msra.gmra.mrb[12].mxu1 %v1211_v17 }
 0x12c   :  { %v1230_v18 = vpop.f32.mrb[0].mxu0 }
 0x12d   :  { %v1252_v19 = vpop.f32.mrb[0].mxu1  ;;  %v1231_v20 = vpop.f32.mrb[1].mxu0 }
 0x12e   :  { %v1253_v21 = vpop.f32.mrb[1].mxu1  ;;  %v1232_v22 = vadd.f32 %v1231_v20, %v1230_v18  ;;  %v1233_v24 = vpop.f32.mrb[2].mxu0 }
 0x12f   :  { %v1254_v23 = vadd.f32 %v1253_v21, %v1252_v19  ;;  %v1255_v25 = vpop.f32.mrb[2].mxu1  ;;  %v1234_v26 = vpop.f32.mrb[3].mxu0 }
 0x130   :  { %v1256_v27 = vpop.f32.mrb[3].mxu1 }
 0x131   :  { %v686_v28 = vadd.f32 %v1254_v23, %v1232_v22 }
 0x14c   :  { %v1274_v29 = vpop.f32.mrb[4].mxu0 }
 0x14d   :  { %v1296_v30 = vpop.f32.mrb[4].mxu1  ;;  %v1275_v31 = vpop.f32.mrb[5].mxu0 }
 0x14e   :  { %v1297_v38 = vpop.f32.mrb[5].mxu1  ;;  %v1276_v40 = vadd.f32 %v1275_v31, %v1274_v29  ;;  %v1277_v42 = vpop.f32.mrb[6].mxu0 }
 0x14f   :  { %v1298_v41 = vadd.f32 %v1297_v38, %v1296_v30  ;;  %v1299_v43 = vpop.f32.mrb[6].mxu1  ;;  %v1278_v44 = vpop.f32.mrb[7].mxu0  ;;  %v1018_v38 = vshrl.u32 %v983_v39, 7 }
 0x150   :  { %v1300_v45 = vpop.f32.mrb[7].mxu1  ;;  %v726_v46 = vadd.f32 %v1276_v40, %v686_v28  ;;  %v1623_v43 = vmov 0.0  }
 0x151   :  { %vm1021_vm4 = vcmp.lt.s32.totalorder %v1018_v38, 2 }
 0x152   :  { %v766_v48 = vadd.f32 %v1298_v41, %v726_v46 }
 0x154   :  { %v979_v50 = vadd.f32 %v1213_v49, %v766_v48 }
 0x156   :  { %v986_v51 = vsel %vm985_vm0, %v979_v50, -1e+30  ;;  %982 = vst [vmem:[#allocation9] sm:$0xff] %v979_v50 }
 0x157   :  { %988 = vmax.xlane.f32.xlu0 %v986_v51 }
 0x16c   :  { %v1318_v56 = vpop.f32.mrb[8].mxu0 }
 0x16d   :  { %v1340_v57 = vpop.f32.mrb[8].mxu1  ;;  %v1319_v58 = vpop.f32.mrb[9].mxu0 }
 0x16e   :  { %v1341_v59 = vpop.f32.mrb[9].mxu1  ;;  %v1320_v60 = vadd.f32 %v1319_v58, %v1318_v56  ;;  %v1321_v61 = vpop.f32.mrb[10].mxu0 }
 0x16f   :  { %v1342_v62 = vadd.f32 %v1341_v59, %v1340_v57  ;;  %v1343_v63 = vpop.f32.mrb[10].mxu1  ;;  %v1322_v32 = vpop.f32.mrb[11].mxu0 }
 0x170   :  { %v1344_v33 = vpop.f32.mrb[11].mxu1 }
 0x171   :  { %v881_v34 = vadd.f32 %v1342_v62, %v1320_v60 }
 0x18c   :  { %v1362_v35 = vpop.f32.mrb[12].mxu0 }
 0x18d   :  { %v1384_v36 = vpop.f32.mrb[12].mxu1  ;;  %v1363_v37 = vpop.f32.mrb[13].mxu0 }
 0x18e   :  { %v1385_v0 = vpop.f32.mrb[13].mxu1  ;;  %v1364_v1 = vadd.f32 %v1363_v37, %v1362_v35  ;;  %v1365_v3 = vpop.f32.mrb[14].mxu0 }
 0x18f   :  { %v1386_v2 = vadd.f32 %v1385_v0, %v1384_v36  ;;  %v1387_v4 = vpop.f32.mrb[14].mxu1  ;;  %v1366_v5 = vpop.f32.mrb[15].mxu0 }
 0x190   :  { %v1388_v6 = vpop.f32.mrb[15].mxu1  ;;  %v921_v7 = vadd.f32 %v1364_v1, %v881_v34 }
 0x192   :  { %v961_v8 = vadd.f32 %v1386_v2, %v921_v7 }
 0x194   :  { %v981_v14 = vadd.f32 %v1213_v49, %v961_v8 }
 0x196   :  { %v987_v16 = vsel %vm985_vm0, %v981_v14, -1e+30 }
 0x1e4   :  { %v989_v52 = vpop.xlane.xlu0 %988 }
 0x1e5   :  { %v990_v53 = vsub.f32 %v986_v51, %v989_v52 }
 0x1e7   :  { %v991_v54 = vmul.f32 1.442695, %v990_v53 }
 0x1e9   :  { %1484 = vpow2.f32 %v991_v54 }
 0x1f3   :  { %v1485_v55 = vpop.eup %1484 }
 0x1f4   :  { %993 = vadd.xlane.f32.xlu0 %v1485_v55 }
 0x281   :  { %v994_v9 = vpop.xlane.xlu0 %993 }
 0x282   :  { %1486 = vlog2.f32 %v994_v9 }
 0x28c   :  { %v1487_v10 = vpop.eup %1486 }
 0x28d   :  { %v996_v11 = vmul.f32 0.6931472, %v1487_v10 }
 0x28f   :  { %v997_v12 = vsub.f32 %v990_v53, %v996_v11 }
 0x291   :  { %v998_v13 = vmul.f32 1.442695, %v997_v12 }
 0x293   :  { %1488 = vpow2.f32 %v998_v13 }
 0x29d   :  { %v1489_v15 = vpop.eup %1488 }
 0x29e   :  { %1024 = vmax.xlane.f32.xlu1 %v1489_v15  ;;  %v1000_v25 = vmul.f32 %v1489_v15, %v997_v12 }
 0x2a0   :  { %v1001_v26 = vsel %vm985_vm0, %v1000_v25, 0.0 }
 0x2a2   :  { %1005 = vmax.xlane.f32.xlu1 %v987_v16 }
 0x32b   :  { %v1025_v17 = vpop.xlane.xlu1 %1024 }
 0x32c   :  { %vm1026_vm1 = vcmp.eq.f32.partialorder %v1489_v15, %v1025_v17 }
 0x32d   :  { %vm1027_vm2 = vmand %vm1026_vm1, %vm985_vm0 }
 0x32e   :  { %v1028_v18 = vsel %vm1027_vm2, %v1949_v47, 16 }
 0x32f   :  { %v1006_v19 = vpop.xlane.xlu1 %1005  ;;  %v1030_v20 = vshra.s32 %v1028_v18, 16  ;;  %v1029_v27 = vand.u32 65535, %v1028_v18 }
 0x330   :  { %v1007_v21 = vsub.f32 %v987_v16, %v1006_v19 }
 0x331   :  { %v1032_v22 = vcvt.s32.f32 %v1030_v20  ;;  %v1031_v29 = vcvt.s32.f32 %v1029_v27 }
 0x332   :  { %v1008_v23 = vmul.f32 1.442695, %v1007_v21 }
 0x333   :  { %1033 = vmin.xlane.f32.xlu0 %v1032_v22 }
 0x334   :  { %1490 = vpow2.f32 %v1008_v23 }
 0x33e   :  { %v1491_v24 = vpop.eup %1490 }
 0x33f   :  { %1010 = vadd.xlane.f32.xlu1 %v1491_v24 }
 0x343   :  { %1002 = vadd.xlane.f32.xlu1 %v1001_v26 }
 0x3c0   :  { %v1034_v28 = vpop.xlane.xlu0 %1033 }
 0x3c1   :  { %vm1035_vm3 = vcmp.eq.f32.partialorder %v1032_v22, %v1034_v28  ;;  %v1040_v50 = vcvt.f32.s32 %v1034_v28 }
 0x3c2   :  { %v1036_v30 = vsel %vm1035_vm3, %v1031_v29, inf }
 0x3c3   :  { %1037 = vmin.xlane.f32.xlu0 %v1036_v30  ;;  %v1041_v52 = vshll.u32 %v1040_v50, 16 }
 0x3cc   :  { %v1011_v31 = vpop.xlane.xlu1 %1010 }
 0x3cd   :  { %1492 = vlog2.f32 %v1011_v31 }
 0x3d0   :  { %v1003_v40 = vpop.xlane.xlu1 %1002 }
 0x3d1   :  { %v1004_v41 = vsub.f32 0.0, %v1003_v40 }
 0x3d3   :  { %vm1022_vm5 = vcmp.lt.f32.partialorder %v1004_v41, 3.4538777  ;;  %v1050_v32 = vsub.f32 2.763102, %v1004_v41 }
 0x3d4   :  { %vm1965_vm7 = vmand %vm1022_vm5, %vm1021_vm4 }
 0x3d5   :  { %v1057_v44 = vsel %vm1965_vm7, 1.0, %v1623_v43  ;;  %v1051_v33 = vmul.f32 1.442695, %v1050_v32 }
 0x3d6   :  { %v1059_v45 = vsel %vm1058_vm6, %v1057_v44, 0.0 }
 0x3d7   :  { %1060 = vadd.xlane.f32.xlu1 %v1059_v45  ;;  %v1493_v46 = vpop.eup %1492 }
 0x3d8   :  { %v1013_v48 = vmul.f32 0.6931472, %v1493_v46 }
 0x3da   :  { %v1014_v39 = vsub.f32 %v1007_v21, %v1013_v48 }
 0x3dc   :  { %v1015_v49 = vmul.f32 1.442695, %v1014_v39 }
 0x3de   :  { %1494 = vpow2.f32 %v1015_v49 }
 0x3df   :  { %1496 = vpow2.f32 %v1051_v33 }
 0x3e8   :  { %v1495_v55 = vpop.eup %1494 }
 0x3e9   :  { %v1497_v1 = vpop.eup %1496 }
 0x450   :  { %v1038_v51 = vpop.xlane.xlu0 %1037 }
 0x451   :  { %v1039_v53 = vcvt.f32.s32 %v1038_v51 }
 0x453   :  { %v1042_v54 = vadd.s32 %v1041_v52, %v1039_v53 }
 0x455   :  { %vm1043_vm8 = vcmp.eq.s32.totalorder %v1949_v47, %v1042_v54 }
 0x456   :  { %v1044_v56 = vsel %vm1043_vm8, %v1495_v55, 0.0 }
 0x457   :  { %1045 = vadd.xlane.f32.xlu0 %v1044_v56 }
 0x464   :  { %v1061_v57 = vpop.xlane.xlu1 %1060 }
 0x465   :  { %v1062_v58 = vrot.slane %v1061_v57, 4 }
 0x467   :  { %v1063_v59 = vadd.f32 %v1062_v58, %v1061_v57 }
 0x469   :  { %v1064_v60 = vrot.slane %v1063_v59, 2 }
 0x46b   :  { %v1065_v61 = vadd.f32 %v1064_v60, %v1063_v59 }
 0x46d   :  { %v1066_v62 = vrot.slane %v1065_v61, 1 }
 0x46f   :  { %v1067_v63 = vadd.f32 %v1066_v62, %v1065_v61 }
 0x471   :  { %1390 = vpush %v1067_v63 }
 0x4e4   :  { %v1046_v34 = vpop.xlane.xlu0 %1045 }
 0x4e5   :  { %v1047_v35 = vsub.f32 %v1025_v17, %v1046_v34 }
 0x4e7   :  { %vm1048_vm9 = vcmp.gt.f32.partialorder %v1047_v35, 0.2  ;;  %v1053_v36 = vmul.f32 1.442695, %v1047_v35 }
 0x4e8   :  { %vm1049_vm10 = vmand %vm1965_vm7, %vm1048_vm9 }
 0x4e9   :  { %1498 = vpow2.f32 %v1053_v36  ;;  %v1069_v37 = vsel %vm1049_vm10, 1.0, %v1623_v43 }
 0x4ea   :  { %v1070_v0 = vsel %vm1058_vm6, %v1069_v37, 0.0 }
 0x4eb   :  { %1071 = vadd.xlane.f32.xlu0 %v1070_v0 }
 0x4f3   :  { %v1499_v2 = vpop.eup %1498 }
 0x4f4   :  { %v1055_v3 = vadd.f32 %v1499_v2, %v1497_v1 }
 0x4f6   :  { %v1056_v4 = vmul.f32 %v1055_v3, %v1004_v41 }
 0x4f8   :  { %v1080_v5 = vsel %vm1049_vm10, %v1056_v4, 0.0 }
 0x4f9   :  { %v1081_v6 = vsel %vm1058_vm6, %v1080_v5, 0.0 }
 0x4fa   :  { %1082 = vadd.xlane.f32.xlu1 %v1081_v6 }
 0x4fb   :  { %1577 = shalt.err (!%p1574_p0)
}
 0x4fc   :  { %s1578_s9 = scalar_lea.hbm %s2008_s4, 128 }
 0x4fd   :  { %p1579_p1 = scmp.ne.s32.totalorder %s2008_s4, %s1578_s9  ;;  %p1582_p2 = scmp.lt.u32.totalorder %s1578_s9, %s2008_s4 }
 0x4ff   :  { %p1584_p3 = pnand %p1582_p2, %p1579_p1 }
 0x501   :  { %1587 = shalt.err (!%p1584_p3)
}
 0x502   :  { %1112 = dma.vmem_to_hbm [thread:$0]  %s1110_s30, 128, %s2008_s4, [#allocation5]   ;;  %vm1094_vm11 = vcmp.eq.s32.totalorder %v1949_v47, 1  ;;  %vm1091_vm12 = vcmp.eq.s32.totalorder %v1949_v47, 0  ;;  %vm1098_vm13 = vcmp.eq.s32.totalorder %v1949_v47, 2 }
 0x503   :  { %s1391_s15 = spop %1390  ;;  %s1625_s17 = smov [#allocation10]  }
 0x504   :  { %v1092_v22 = vstv %s1391_s15  ;;  %s1119_s18 = sshll.u32 %s1625_s17, 4  ;;  %s1120_s18 = int_to_ptr.vmem [resolvable:$true] %s1119_s18 }
 0x505   :  { %v1093_v24 = vsel %vm1091_vm12, %v1092_v22, 0.0  ;;  %s1588_s19 = scalar_lea.vmem %s1120_s18, 128  ;;  %p1593_p5 = scmp.lt.s32.totalorder %s1120_s18, %s1120_s18 }
 0x506   :  { %p1589_p4 = scmp.ne.s32.totalorder %s1120_s18, %s1588_s19  ;;  %p1594_p6 = scmp.lt.s32.totalorder %s1588_s19, %s1588_s19 }
 0x508   :  { %p1595_p7 = por %p1594_p6, %p1593_p5 }
 0x50a   :  { %p1596_p8 = pnand %p1595_p7, %p1589_p4 }
 0x578   :  { %v1072_v7 = vpop.xlane.xlu0 %1071 }
 0x579   :  { %v1073_v8 = vrot.slane %v1072_v7, 4 }
 0x57b   :  { %v1074_v9 = vadd.f32 %v1073_v8, %v1072_v7 }
 0x57d   :  { %v1075_v10 = vrot.slane %v1074_v9, 2 }
 0x57f   :  { %v1076_v11 = vadd.f32 %v1075_v10, %v1074_v9 }
 0x581   :  { %v1077_v12 = vrot.slane %v1076_v11, 1 }
 0x583   :  { %v1078_v13 = vadd.f32 %v1077_v12, %v1076_v11 }
 0x585   :  { %1392 = vpush %v1078_v13 }
 0x587   :  { %v1083_v14 = vpop.xlane.xlu1 %1082 }
 0x588   :  { %v1084_v15 = vrot.slane %v1083_v14, 4 }
 0x58a   :  { %v1085_v16 = vadd.f32 %v1084_v15, %v1083_v14 }
 0x58c   :  { %v1086_v17 = vrot.slane %v1085_v16, 2 }
 0x58e   :  { %v1087_v18 = vadd.f32 %v1086_v17, %v1085_v16 }
 0x590   :  { %v1088_v19 = vrot.slane %v1087_v18, 1 }
 0x592   :  { %v1089_v20 = vadd.f32 %v1088_v19, %v1087_v18 }
 0x594   :  { %1394 = vpush %v1089_v20 }
 0x5b6   :  { %s1393_s16 = spop %1392 }
 0x5b7   :  { %v1095_v21 = vstv %s1393_s16 }
 0x5b8   :  { %v1096_v23 = vsel %vm1094_vm11, %v1095_v21, 0.0 }
 0x5b9   :  { %v1097_v25 = vadd.f32 %v1096_v23, %v1093_v24 }
 0x5c5   :  { %s1395_s4 = spop %1394 }
 0x5c6   :  { %v1099_v26 = vstv %s1395_s4 }
 0x5c7   :  { %v1100_v27 = vsel %vm1098_vm13, %v1099_v26, 0.0 }
 0x5c8   :  { %v1101_v28 = vadd.f32 %v1100_v27, %v1097_v25 }
 0x5ca   :  { %1102 = vst [vmem:[#allocation10] sm:$0xff] %v1101_v28 }
 0x5cb   :  { %1599 = shalt.err (!%p1596_p8)
}
 0x5cc   :  { %s1600_s23 = scalar_lea.hbm %s2009_s5, 128 }
 0x5cd   :  { %p1601_p9 = scmp.ne.s32.totalorder %s2009_s5, %s1600_s23  ;;  %p1604_p10 = scmp.lt.u32.totalorder %s1600_s23, %s2009_s5 }
 0x5cf   :  { %p1606_p11 = pnand %p1604_p10, %p1601_p9 }
 0x5d1   :  { %1609 = shalt.err (!%p1606_p11)
}
 0x5d2   :  { %1122 = dma.vmem_to_hbm [thread:$0]  %s1120_s18, 128, %s2009_s5, [#allocation11]  }
 0x5d3   :  { %1614 = dma.done.wait [#allocation5], 128  }
 0x5d4   :  { %1615 = vsyncadd [#allocation5], 4294967168 }
 0x5d5   :  { %1616 = dma.done.wait [#allocation11], 128  }
 0x5d6   :  { %1617 = vsyncadd [#allocation11], 4294967168 }
 0x5d7   :  { %1129 = vsyncpa [#allocation4], 1 }
 0x5d8   :  { %1130 = vsyncpa [#allocation7], 1 }
 0x5d9   :  { %1131 = vsyncpa [#allocation5], 1 }
 0x5da   :  { %1132 = vsyncpa [#allocation11], 1 }

</bundles_post_ra>
